<compile_context>
chip_gen: v5e
topology: v5e:2x2
jax: 0.10.0
libtpu: 0.0.40
codegen_flags: <defaults>
</compile_context>

<pallas_src>
import jax
import jax.numpy as jnp
from jax.experimental import pallas as pl
from jax.experimental.pallas import tpu as pltpu


def bigram_kernel(idx_ref, table_ref, out_ref):
    # idx_ref:   (TN, 1)  int32   (VMEM)
    # table_ref: (V, V)   float32 (VMEM, resident across the whole grid)
    # out_ref:   (TN, V)  float32 (VMEM)
    idx = idx_ref[...]                                    # (TN, 1)
    tn = idx_ref.shape[0]
    vocab = table_ref.shape[0]
    # one-hot(idx): (TN, V).  iota+compare+cast rides the VPU slots while the
    # MXU does the matmul, so it stays filler under the MXU-bound path.
    lane_ids = jax.lax.broadcasted_iota(jnp.int32, (tn, vocab), 1)
    onehot = (lane_ids == idx).astype(table_ref.dtype)
    # row gather == onehot @ table  (runs on the MXU)
    # NOTE: out-of-range ids produce an all-zero one-hot row -> zero output
    # row (PyTorch would raise); callers must pass valid ids.
    out_ref[...] = jnp.dot(
        onehot, table_ref[...], preferred_element_type=jnp.float32
    ).astype(out_ref.dtype)


def bigram_forward(idx, table, *, tn=None):
    """idx: (B, T) int ids, table: (V, V) float32 -> logits (B, T, V) float32."""
    B, T = idx.shape
    V = table.shape[0]
    n_tok = B * T

    # Token tile: multiple of 256 (v6e/v7x MXU rows; also multiple of 128 for
    # v5e), capped at 2048 so the tile fits comfortably in v7x's 64 MiB VMEM.
    if tn is None:
        tn = min(2048, ((n_tok + 255) // 256) * 256)
    n_pad = pl.cdiv(n_tok, tn) * tn

    idx_flat = idx.reshape(n_tok).astype(jnp.int32)
    if n_pad != n_tok:
        idx_flat = jnp.pad(idx_flat, (0, n_pad - n_tok))   # pad rows sliced off below
    idx_flat = idx_flat.reshape(n_pad, 1)

    out_flat = pl.pallas_call(
        bigram_kernel,
        out_shape=jax.ShapeDtypeStruct((n_pad, V), jnp.float32),
        grid_spec=pltpu.PrefetchScalarGridSpec(
            num_scalar_prefetch=0,
            grid=(n_pad // tn,),
            in_specs=[
                pl.BlockSpec((tn, 1), lambda i: (i, 0)),   # token tile of ids
                pl.BlockSpec((V, V), lambda i: (0, 0)),    # table resident in VMEM
            ],
            out_specs=pl.BlockSpec((tn, V), lambda i: (i, 0)),
        ),
        compiler_params=pltpu.CompilerParams(
            dimension_semantics=("parallel",),             # megacore on v7x
            vmem_limit_bytes=32 * 1024 * 1024,             # safe on v5e/v6e/v7x
        ),
    )(idx_flat, table)

    return out_flat[:n_tok].reshape(B, T, V)
    # TODO(synk): for large vocabularies (V >= ~2048) the (V,V) f32 table no
    # longer fits VMEM and the O(n_tok*V^2) one-hot matmul is wasteful; switch
    # to a PrefetchScalarGridSpec(num_scalar_prefetch=1) DMA row gather
    # (table left in HBM, per-row Element(1) index_map on the token ids).
    # TODO(synk): the optional CrossEntropyLoss branch in the reference is
    # buggy (calls `.vire`) and only active when targets is not None; the
    # targets=None path (loss = None) is what is implemented here.


if __name__ == "__main__":
    key = jax.random.PRNGKey(0)
    k_tab, k_idx, k_idx2 = jax.random.split(key, 3)

    vocab_size = 128   # lane-aligned vocab
    B, T = 2, 8

    # Module __init__ uses zeros((V, V)); use deterministic random values here
    # so the kernel output is non-trivial (shapes/dtypes match the module).
    table = jax.random.normal(k_tab, (vocab_size, vocab_size), dtype=jnp.float32)
    idx = jax.random.randint(k_idx, (B, T), 0, vocab_size, dtype=jnp.int32)

    logits = bigram_forward(idx, table)
    jax.block_until_ready(logits)

    # correctness check vs. plain-JAX gather reference
    ref = table[idx]
    assert logits.shape == (B, T, vocab_size)
    assert jnp.allclose(logits, ref, atol=1e-5), "mismatch vs reference gather"

    # second check exercising the multi-tile grid + padding path
    B2, T2 = 2, 300                       # 600 tokens -> padded to 768, grid=(3,)
    idx2 = jax.random.randint(k_idx2, (B2, T2), 0, vocab_size, dtype=jnp.int32)
    logits2 = bigram_forward(idx2, table, tn=256)
    jax.block_until_ready(logits2)
    ref2 = table[idx2]
    assert logits2.shape == (B2, T2, vocab_size)
    assert jnp.allclose(logits2, ref2, atol=1e-5), "mismatch vs reference gather (tiled)"

    print("KERNEL_OK")
</pallas_src>

<mosaic_0001>
module attributes {stable_mosaic.version = 11 : i64} {
  func.func @bigram_kernel(%arg0: i32, %arg1: memref<256x1xi32, #tpu.memory_space<vmem>>, %arg2: memref<128x128xf32, #tpu.memory_space<vmem>>, %arg3: memref<256x128xf32, #tpu.memory_space<vmem>>) attributes {dimension_semantics = [#tpu.dimension_semantics<parallel>], iteration_bounds = array<i64: 1>, scalar_prefetch = 0 : i64, scratch_operands = 0 : i64, tpu.core_type = #tpu.core_type<tc>, window_params = [{transform_indices = @transform_0, window_bounds = array<i64: 256, 1>}, {pipeline_mode = #tpu.pipeline_mode<synchronous>, transform_indices = @transform_1, window_bounds = array<i64: 128, 128>}, {transform_indices = @transform_2, window_bounds = array<i64: 256, 128>}]} {
    %c0 = arith.constant 0 : index
    %c0_0 = arith.constant 0 : index
    %0 = vector.load %arg1[%c0, %c0_0] : memref<256x1xi32, #tpu.memory_space<vmem>>, vector<256x1xi32>
    %1 = tpu.iota {dimensions = array<i32: 1>} : vector<256x128xi32>
    %2 = vector.broadcast %0 : vector<256x1xi32> to vector<256x128xi32>
    %3 = arith.cmpi eq, %1, %2 : vector<256x128xi32>
    %4 = arith.extui %3 : vector<256x128xi1> to vector<256x128xi32>
    %5 = arith.sitofp %4 : vector<256x128xi32> to vector<256x128xf32>
    %c0_1 = arith.constant 0 : index
    %c0_2 = arith.constant 0 : index
    %6 = vector.load %arg2[%c0_1, %c0_2] : memref<128x128xf32, #tpu.memory_space<vmem>>, vector<128x128xf32>
    %cst = arith.constant dense<0.000000e+00> : vector<256x128xf32>
    %7 = tpu.matmul %5, %6, %cst {dimension_numbers = #tpu.dot_dimension_numbers<[1], [0], [0], [1], [0, 0, 1, 1], [], []>} : vector<256x128xf32>, vector<128x128xf32>, vector<256x128xf32> -> vector<256x128xf32>
    %c0_3 = arith.constant 0 : index
    %c0_4 = arith.constant 0 : index
    %8 = vector.load %arg3[%c0_3, %c0_4] : memref<256x128xf32, #tpu.memory_space<vmem>>, vector<256x128xf32>
    tpu.vector_store %arg3[%c0_3, %c0_4], %7 {strides = array<i32>} : memref<256x128xf32, #tpu.memory_space<vmem>>, vector<256x128xf32>,
    return
  }
  func.func @transform_0(%arg0: i32) -> (i32, i32) {
    %c0_i32 = arith.constant 0 : i32
    %c0_i32_0 = arith.constant 0 : i32
    return %arg0, %c0_i32 : i32, i32
  }
  func.func @transform_1(%arg0: i32) -> (i32, i32) {
    %c0_i32 = arith.constant 0 : i32
    %c0_i32_0 = arith.constant 0 : i32
    %c0_i32_1 = arith.constant 0 : i32
    return %c0_i32, %c0_i32_0 : i32, i32
  }
  func.func @transform_2(%arg0: i32) -> (i32, i32) {
    %c0_i32 = arith.constant 0 : i32
    %c0_i32_0 = arith.constant 0 : i32
    return %arg0, %c0_i32 : i32, i32
  }
}

</mosaic_0001>

<bundles_post_ra>
// kernel: tpu_custom_call.1
= control target key start
LH: loop header
LB: loop body
LE: loop exit
PB: predicated region body
PF: predicated region fallthrough
CT: control target
= control target key end

     0   :  { %v563_v3 = vmov 0   ;;  %s796_s0 = inlined_call_operand.vmem [shape: s32[256,1], index: 0, kind: input, shape index: {}]   ;;  %s797_s1 = inlined_call_operand.vmem [shape: f32[128,128], index: 1, kind: input, shape index: {}]   ;;  %s798_s2 = inlined_call_operand.hbm [shape: f32[256,128], index: 2, kind: output, shape index: {}]  }
   0x1   :  { %v29_v0 = vld [vmem:[%s796_s0 + $0x88] sm:$0xff]  ;;  %v28_v1 = vld [vmem:[%s796_s0 + $0x80] sm:$0xff]  ;;  %536 = vset.pattern.permute.xlu2 %v563_v3  ;;  %535 = vset.pattern.permute.xlu1 %v563_v3 }
   0x2   :  { %v12_v2 = vld [vmem:[%s796_s0] sm:$0xff]  ;;  %534 = vset.pattern.permute.xlu0 %v563_v3  ;;  %98 = vperm.xlu2 %536, %v29_v0  }
   0x3   :  { %95 = vperm.xlu0 %534, %v28_v1   ;;  %47 = vperm.xlu1 %535, %v12_v2  }
   0x4   :  { %7 = vsyncpa [#allocation3], 0  ;;  %v37_v4 = vld [vmem:[%s796_s0 + $0xc8] sm:$0xff]  ;;  %v36_v5 = vld [vmem:[%s796_s0 + $0xc0] sm:$0xff]  ;;  %v44_v51 = vlaneseq  ;;  %v564_v56 = vmov 1.0   ;;  %s405_s23 = sshll.u32 %s798_s2, 4  ;;  %s406_s23 = int_to_ptr.hbm [resolvable:$true] %s405_s23 }
   0x5   :  { %v20_v6 = vld [vmem:[%s796_s0 + $0x40] sm:$0xff]  ;;  %v30_v7 = vld [vmem:[%s796_s0 + $0x90] sm:$0xff]  ;;  %v13_v8 = vld [vmem:[%s796_s0 + $0x8] sm:$0xff]  ;;  %s566_s24 = smov 128   ;;  %s567_s25 = smov 8  }
   0x6   :  { %v21_v9 = vld [vmem:[%s796_s0 + $0x48] sm:$0xff]  ;;  %v22_v10 = vld [vmem:[%s796_s0 + $0x50] sm:$0xff]  ;;  %v15_v13 = vld [vmem:[%s796_s0 + $0x18] sm:$0xff]  ;;  %v727_v52 = vand.u32 127, %v44_v51 }
   0x7   :  { %v38_v11 = vld [vmem:[%s796_s0 + $0xd0] sm:$0xff]  ;;  %v31_v14 = vld [vmem:[%s796_s0 + $0x98] sm:$0xff]  ;;  %v40_v16 = vld [vmem:[%s796_s0 + $0xe0] sm:$0xff] }
   0x8   :  { %v14_v12 = vld [vmem:[%s796_s0 + $0x10] sm:$0xff]  ;;  %v39_v15 = vld [vmem:[%s796_s0 + $0xd8] sm:$0xff]  ;;  %v32_v18 = vld [vmem:[%s796_s0 + $0xa0] sm:$0xff] }
   0x9   :  { %v23_v17 = vld [vmem:[%s796_s0 + $0x58] sm:$0xff]  ;;  %v33_v19 = vld [vmem:[%s796_s0 + $0xa8] sm:$0xff]  ;;  %v16_v20 = vld [vmem:[%s796_s0 + $0x20] sm:$0xff] }
   0xa   :  { %122 = vperm.xlu2 %536, %v37_v4   ;;  %v24_v21 = vld [vmem:[%s796_s0 + $0x60] sm:$0xff]  ;;  %v253_v22 = vld [vmem:[%s797_s1 + $0x78] sm:$0xff]  ;;  %v252_v23 = vld [vmem:[%s797_s1 + $0x70] sm:$0xff] }
   0xb   :  { %119 = vperm.xlu0 %534, %v36_v5   ;;  %71 = vperm.xlu1 %535, %v20_v6   ;;  %v251_v24 = vld [vmem:[%s797_s1 + $0x68] sm:$0xff]  ;;  %v250_v28 = vld [vmem:[%s797_s1 + $0x60] sm:$0xff]  ;;  %v249_v29 = vld [vmem:[%s797_s1 + $0x58] sm:$0xff] }
   0xc   :  { %254 = vmatpush.msra.mxu0 %v253_v22  ;;  %482 = vmatpush.msra.mxu2 %v253_v22  ;;  %v25_v25 = vld [vmem:[%s796_s0 + $0x68] sm:$0xff]  ;;  %v18_v30 = vld [vmem:[%s796_s0 + $0x30] sm:$0xff]  ;;  %v246_v35 = vld [vmem:[%s797_s1 + $0x40] sm:$0xff] }
   0xd   :  { %481 = vmatpush.msra.mxu1 %v253_v22  ;;  %483 = vmatpush.msra.mxu3 %v253_v22  ;;  %v41_v26 = vld [vmem:[%s796_s0 + $0xe8] sm:$0xff]  ;;  %v248_v31 = vld [vmem:[%s797_s1 + $0x50] sm:$0xff]  ;;  %v245_v36 = vld [vmem:[%s797_s1 + $0x38] sm:$0xff] }
   0xe   :  { %255 = vmatpush.msra.mxu0 %v252_v23  ;;  %485 = vmatpush.msra.mxu2 %v252_v23  ;;  %v17_v27 = vld [vmem:[%s796_s0 + $0x28] sm:$0xff]  ;;  %v34_v32 = vld [vmem:[%s796_s0 + $0xb0] sm:$0xff]  ;;  %v43_v37 = vld [vmem:[%s796_s0 + $0xf8] sm:$0xff] }
   0xf   :  { %484 = vmatpush.msra.mxu1 %v252_v23  ;;  %486 = vmatpush.msra.mxu3 %v252_v23  ;;  %v42_v33 = vld [vmem:[%s796_s0 + $0xf0] sm:$0xff]  ;;  %v247_v34 = vld [vmem:[%s797_s1 + $0x48] sm:$0xff]  ;;  %v35_v39 = vld [vmem:[%s796_s0 + $0xb8] sm:$0xff] }
  0x10   :  { %256 = vmatpush.msra.mxu0 %v251_v24  ;;  %488 = vmatpush.msra.mxu2 %v251_v24  ;;  %v26_v38 = vld [vmem:[%s796_s0 + $0x70] sm:$0xff]  ;;  %v243_v41 = vld [vmem:[%s797_s1 + $0x28] sm:$0xff]  ;;  %v242_v42 = vld [vmem:[%s797_s1 + $0x20] sm:$0xff] }
  0x11   :  { %487 = vmatpush.msra.mxu1 %v251_v24  ;;  %489 = vmatpush.msra.mxu3 %v251_v24  ;;  %v244_v40 = vld [vmem:[%s797_s1 + $0x30] sm:$0xff]  ;;  %v241_v43 = vld [vmem:[%s797_s1 + $0x18] sm:$0xff]  ;;  %v239_v47 = vld [vmem:[%s797_s1 + $0x8] sm:$0xff] }
  0x12   :  { %101 = vperm.xlu2 %536, %v30_v7   ;;  %257 = vmatpush.msra.mxu0 %v250_v28  ;;  %v19_v44 = vld [vmem:[%s796_s0 + $0x38] sm:$0xff]  ;;  %v240_v46 = vld [vmem:[%s797_s1 + $0x10] sm:$0xff]  ;;  %v238_v48 = vld [vmem:[%s797_s1] sm:$0xff]  ;;  %s565_s1 = smov [#allocation2]  }
  0x13   :  { %50 = vperm.xlu0 %534, %v13_v8   ;;  %74 = vperm.xlu1 %535, %v21_v9   ;;  %v27_v45 = vld [vmem:[%s796_s0 + $0x78] sm:$0xff]  ;;  %s403_s20 = sshll.u32 %s565_s1, 4  ;;  %s404_s20 = int_to_ptr.vmem [resolvable:$true] %s403_s20 }
  0x14   :  { %491 = vmatpush.msra.mxu2 %v250_v28  ;;  %490 = vmatpush.msra.mxu1 %v250_v28 }
  0x15   :  { %492 = vmatpush.msra.mxu3 %v250_v28  ;;  %258 = vmatpush.msra.mxu0 %v249_v29 }
  0x16   :  { %494 = vmatpush.msra.mxu2 %v249_v29  ;;  %493 = vmatpush.msra.mxu1 %v249_v29 }
  0x17   :  { %495 = vmatpush.msra.mxu3 %v249_v29  ;;  %259 = vmatpush.msra.mxu0 %v248_v31 }
  0x18   :  { %497 = vmatpush.msra.mxu2 %v248_v31  ;;  %496 = vmatpush.msra.mxu1 %v248_v31 }
  0x19   :  { %260 = vmatpush.msra.mxu0 %v247_v34  ;;  %498 = vmatpush.msra.mxu3 %v248_v31 }
  0x1a   :  { %77 = vperm.xlu2 %536, %v22_v10   ;;  %500 = vmatpush.msra.mxu2 %v247_v34 }
  0x1b   :  { %125 = vperm.xlu0 %534, %v38_v11   ;;  %53 = vperm.xlu1 %535, %v14_v12  }
  0x1c   :  { %261 = vmatpush.msra.mxu0 %v246_v35  ;;  %499 = vmatpush.msra.mxu1 %v247_v34 }
  0x1d   :  { %501 = vmatpush.msra.mxu3 %v247_v34  ;;  %503 = vmatpush.msra.mxu2 %v246_v35 }
  0x1e   :  { %262 = vmatpush.msra.mxu0 %v245_v36  ;;  %502 = vmatpush.msra.mxu1 %v246_v35 }
  0x1f   :  { %504 = vmatpush.msra.mxu3 %v246_v35  ;;  %506 = vmatpush.msra.mxu2 %v245_v36 }
  0x20   :  { %263 = vmatpush.msra.mxu0 %v244_v40  ;;  %505 = vmatpush.msra.mxu1 %v245_v36 }
  0x21   :  { %509 = vmatpush.msra.mxu2 %v244_v40  ;;  %507 = vmatpush.msra.mxu3 %v245_v36 }
  0x22   :  { %56 = vperm.xlu2 %536, %v15_v13   ;;  %264 = vmatpush.msra.mxu0 %v243_v41 }
  0x23   :  { %104 = vperm.xlu0 %534, %v31_v14   ;;  %128 = vperm.xlu1 %535, %v39_v15  }
  0x24   :  { %512 = vmatpush.msra.mxu2 %v243_v41  ;;  %508 = vmatpush.msra.mxu1 %v244_v40 }
  0x25   :  { %510 = vmatpush.msra.mxu3 %v244_v40  ;;  %265 = vmatpush.msra.mxu0 %v242_v42 }
  0x26   :  { %515 = vmatpush.msra.mxu2 %v242_v42  ;;  %511 = vmatpush.msra.mxu1 %v243_v41 }
  0x27   :  { %513 = vmatpush.msra.mxu3 %v243_v41  ;;  %266 = vmatpush.msra.mxu0 %v241_v43 }
  0x28   :  { %518 = vmatpush.msra.mxu2 %v241_v43  ;;  %514 = vmatpush.msra.mxu1 %v242_v42 }
  0x29   :  { %267 = vmatpush.msra.mxu0 %v240_v46  ;;  %516 = vmatpush.msra.mxu3 %v242_v42 }
  0x2a   :  { %131 = vperm.xlu2 %536, %v40_v16   ;;  %521 = vmatpush.msra.mxu2 %v240_v46 }
  0x2b   :  { %80 = vperm.xlu0 %534, %v23_v17   ;;  %107 = vperm.xlu1 %535, %v32_v18  }
  0x2c   :  { %268 = vmatpush.msra.mxu0 %v239_v47  ;;  %524 = vmatpush.msra.mxu2 %v239_v47 }
  0x2d   :  { %517 = vmatpush.msra.mxu1 %v241_v43  ;;  %519 = vmatpush.msra.mxu3 %v241_v43 }
  0x2e   :  { %269 = vmatpush.msra.mxu0 %v238_v48  ;;  %527 = vmatpush.msra.mxu2 %v238_v48 }
  0x2f   :  { %520 = vmatpush.msra.mxu1 %v240_v46  ;;  %522 = vmatpush.msra.mxu3 %v240_v46 }
  0x31   :  { %523 = vmatpush.msra.mxu1 %v239_v47  ;;  %525 = vmatpush.msra.mxu3 %v239_v47 }
  0x32   :  { %110 = vperm.xlu2 %536, %v33_v19  }
  0x33   :  { %59 = vperm.xlu0 %534, %v16_v20   ;;  %83 = vperm.xlu1 %535, %v24_v21  }
  0x34   :  { %526 = vmatpush.msra.mxu1 %v238_v48  ;;  %528 = vmatpush.msra.mxu3 %v238_v48 }
  0x3a   :  { %86 = vperm.xlu2 %536, %v25_v25  }
  0x3b   :  { %134 = vperm.xlu0 %534, %v41_v26   ;;  %62 = vperm.xlu1 %535, %v17_v27  }
  0x42   :  { %65 = vperm.xlu2 %536, %v18_v30  }
  0x43   :  { %113 = vperm.xlu0 %534, %v34_v32   ;;  %137 = vperm.xlu1 %535, %v42_v33  }
  0x4a   :  { %140 = vperm.xlu2 %536, %v43_v37  }
  0x4b   :  { %89 = vperm.xlu0 %534, %v26_v38   ;;  %116 = vperm.xlu1 %535, %v35_v39  }
  0x53   :  { %68 = vperm.xlu0 %534, %v19_v44   ;;  %92 = vperm.xlu1 %535, %v27_v45  }
  0x5c   :  { %v99_v49 = vpop.permute.xlu2 %98 }
  0x5d   :  { %vm159_vm2 = vcmp.eq.s32.totalorder %v727_v52, %v99_v49 }
  0x64   :  { %v123_v50 = vpop.permute.xlu2 %122 }
  0x65   :  { %vm167_vm7 = vcmp.eq.s32.totalorder %v727_v52, %v123_v50 }
  0x6c   :  { %v102_v55 = vpop.permute.xlu2 %101 }
  0x6d   :  { %vm160_vm8 = vcmp.eq.s32.totalorder %v727_v52, %v102_v55 }
  0x74   :  { %v78_v59 = vpop.permute.xlu2 %77 }
  0x75   :  { %v96_v53 = vpop.permute.xlu0 %95  ;;  %v48_v54 = vpop.permute.xlu1 %47  ;;  %vm152_vm9 = vcmp.eq.s32.totalorder %v727_v52, %v78_v59 }
  0x76   :  { %vm158_vm0 = vcmp.eq.s32.totalorder %v727_v52, %v96_v53  ;;  %vm142_vm1 = vcmp.eq.s32.totalorder %v727_v52, %v48_v54 }
  0x77   :  { %449 = vmatmul.msk.f32.vlgmr.msra.gmra.mxu0 %vm142_vm1, %v564_v56  ;;  %465 = vmatmul.msk.f32.vlgmr.msra.gmra.mxu2 %vm158_vm0, %v564_v56 }
  0x7c   :  { %v57_v62 = vpop.permute.xlu2 %56 }
  0x7d   :  { %v120_v57 = vpop.permute.xlu0 %119  ;;  %v72_v58 = vpop.permute.xlu1 %71  ;;  %vm145_vm12 = vcmp.eq.s32.totalorder %v727_v52, %v57_v62 }
  0x7e   :  { %vm166_vm3 = vcmp.eq.s32.totalorder %v727_v52, %v120_v57  ;;  %vm150_vm4 = vcmp.eq.s32.totalorder %v727_v52, %v72_v58 }
  0x7f   :  { %457 = vmatmul.msk.f32.vlgmr.msra.gmra.mxu1 %vm150_vm4, %v564_v56  ;;  %466 = vmatmul.msk.f32.gmra.mxu2 %vm159_vm2, %v564_v56 }
  0x80   :  { %473 = vmatmul.msk.f32.vlgmr.msra.gmra.mxu3 %vm166_vm3, %v564_v56 }
  0x84   :  { %v132_v1 = vpop.permute.xlu2 %131 }
  0x85   :  { %v51_v60 = vpop.permute.xlu0 %50  ;;  %v75_v61 = vpop.permute.xlu1 %74  ;;  %vm170_vm1 = vcmp.eq.s32.totalorder %v727_v52, %v132_v1 }
  0x86   :  { %vm143_vm5 = vcmp.eq.s32.totalorder %v727_v52, %v51_v60  ;;  %vm151_vm6 = vcmp.eq.s32.totalorder %v727_v52, %v75_v61 }
  0x87   :  { %450 = vmatmul.msk.f32.gmra.mxu0 %vm143_vm5, %v564_v56  ;;  %458 = vmatmul.msk.f32.gmra.mxu1 %vm151_vm6, %v564_v56 }
  0x88   :  { %467 = vmatmul.msk.f32.gmra.mxu2 %vm160_vm8, %v564_v56  ;;  %474 = vmatmul.msk.f32.gmra.mxu3 %vm167_vm7, %v564_v56 }
  0x8c   :  { %v111_v6 = vpop.permute.xlu2 %110 }
  0x8d   :  { %v126_v63 = vpop.permute.xlu0 %125  ;;  %v54_v0 = vpop.permute.xlu1 %53  ;;  %vm163_vm4 = vcmp.eq.s32.totalorder %v727_v52, %v111_v6 }
  0x8e   :  { %vm168_vm10 = vcmp.eq.s32.totalorder %v727_v52, %v126_v63  ;;  %vm144_vm11 = vcmp.eq.s32.totalorder %v727_v52, %v54_v0 }
  0x8f   :  { %451 = vmatmul.msk.f32.gmra.mxu0 %vm144_vm11, %v564_v56  ;;  %459 = vmatmul.msk.f32.gmra.mxu1 %vm152_vm9, %v564_v56 }
  0x90   :  { %475 = vmatmul.msk.f32.gmra.mxu3 %vm168_vm10, %v564_v56 }
  0x94   :  { %v87_v9 = vpop.permute.xlu2 %86 }
  0x95   :  { %v105_v2 = vpop.permute.xlu0 %104  ;;  %v129_v3 = vpop.permute.xlu1 %128  ;;  %vm155_vm5 = vcmp.eq.s32.totalorder %v727_v52, %v87_v9 }
  0x96   :  { %vm161_vm13 = vcmp.eq.s32.totalorder %v727_v52, %v105_v2  ;;  %vm169_vm14 = vcmp.eq.s32.totalorder %v727_v52, %v129_v3 }
  0x97   :  { %452 = vmatmul.msk.f32.gmra.mxu0 %vm145_vm12, %v564_v56  ;;  %468 = vmatmul.msk.f32.gmra.mxu2 %vm161_vm13, %v564_v56 }
  0x98   :  { %476 = vmatmul.msk.f32.gmra.mxu3 %vm169_vm14, %v564_v56 }
  0x9c   :  { %v66_v12 = vpop.permute.xlu2 %65 }
  0x9d   :  { %v81_v4 = vpop.permute.xlu0 %80  ;;  %v108_v5 = vpop.permute.xlu1 %107  ;;  %vm148_vm8 = vcmp.eq.s32.totalorder %v727_v52, %v66_v12 }
  0x9e   :  { %vm153_vm15 = vcmp.eq.s32.totalorder %v727_v52, %v81_v4  ;;  %vm162_vm0 = vcmp.eq.s32.totalorder %v727_v52, %v108_v5 }
  0x9f   :  { %460 = vmatmul.msk.f32.gmra.mxu1 %vm153_vm15, %v564_v56  ;;  %469 = vmatmul.msk.f32.gmra.mxu2 %vm162_vm0, %v564_v56 }
  0xa0   :  { %477 = vmatmul.msk.f32.gmra.mxu3 %vm170_vm1, %v564_v56 }
  0xa4   :  { %v141_v15 = vpop.permute.xlu2 %140 }
  0xa5   :  { %v60_v7 = vpop.permute.xlu0 %59  ;;  %v84_v8 = vpop.permute.xlu1 %83  ;;  %vm173_vm13 = vcmp.eq.s32.totalorder %v727_v52, %v141_v15 }
  0xa6   :  { %vm146_vm2 = vcmp.eq.s32.totalorder %v727_v52, %v60_v7  ;;  %vm154_vm3 = vcmp.eq.s32.totalorder %v727_v52, %v84_v8 }
  0xa7   :  { %453 = vmatmul.msk.f32.gmra.mxu0 %vm146_vm2, %v564_v56  ;;  %461 = vmatmul.msk.f32.gmra.mxu1 %vm154_vm3, %v564_v56 }
  0xa8   :  { %470 = vmatmul.msk.f32.gmra.mxu2 %vm163_vm4, %v564_v56 }
  0xad   :  { %v135_v10 = vpop.permute.xlu0 %134  ;;  %v63_v11 = vpop.permute.xlu1 %62 }
  0xae   :  { %vm171_vm6 = vcmp.eq.s32.totalorder %v727_v52, %v135_v10  ;;  %vm147_vm7 = vcmp.eq.s32.totalorder %v727_v52, %v63_v11 }
  0xaf   :  { %454 = vmatmul.msk.f32.gmra.mxu0 %vm147_vm7, %v564_v56  ;;  %462 = vmatmul.msk.f32.gmra.mxu1 %vm155_vm5, %v564_v56 }
  0xb0   :  { %478 = vmatmul.msk.f32.gmra.mxu3 %vm171_vm6, %v564_v56 }
  0xb5   :  { %v114_v13 = vpop.permute.xlu0 %113  ;;  %v138_v14 = vpop.permute.xlu1 %137 }
  0xb6   :  { %vm164_vm9 = vcmp.eq.s32.totalorder %v727_v52, %v114_v13  ;;  %vm172_vm10 = vcmp.eq.s32.totalorder %v727_v52, %v138_v14 }
  0xb7   :  { %455 = vmatmul.msk.f32.gmra.mxu0 %vm148_vm8, %v564_v56  ;;  %471 = vmatmul.msk.f32.gmra.mxu2 %vm164_vm9, %v564_v56 }
  0xb8   :  { %479 = vmatmul.msk.f32.gmra.mxu3 %vm172_vm10, %v564_v56 }
  0xbd   :  { %v90_v16 = vpop.permute.xlu0 %89  ;;  %v117_v17 = vpop.permute.xlu1 %116 }
  0xbe   :  { %vm156_vm11 = vcmp.eq.s32.totalorder %v727_v52, %v90_v16  ;;  %vm165_vm12 = vcmp.eq.s32.totalorder %v727_v52, %v117_v17 }
  0xbf   :  { %463 = vmatmul.msk.f32.gmra.mxu1 %vm156_vm11, %v564_v56  ;;  %472 = vmatmul.msk.f32.gmra.mxu2 %vm165_vm12, %v564_v56 }
  0xc0   :  { %480 = vmatmul.msk.f32.gmra.mxu3 %vm173_vm13, %v564_v56 }
  0xc5   :  { %v69_v18 = vpop.permute.xlu0 %68  ;;  %v93_v19 = vpop.permute.xlu1 %92 }
  0xc6   :  { %vm149_vm14 = vcmp.eq.s32.totalorder %v727_v52, %v69_v18  ;;  %vm157_vm15 = vcmp.eq.s32.totalorder %v727_v52, %v93_v19 }
  0xc7   :  { %456 = vmatmul.msk.f32.gmra.mxu0 %vm149_vm14, %v564_v56  ;;  %464 = vmatmul.msk.f32.gmra.mxu1 %vm157_vm15, %v564_v56 }
  0xf4   :  { %v271_v20 = vpop.f32.mrf.mxu0 }
  0xf5   :  { %367 = vst [vmem:[#allocation2] sm:$0xff] %v271_v20 }
  0xfa   :  { %v319_v21 = vpop.f32.mrf.mxu2 }
  0xfb   :  { %383 = vst [vmem:[#allocation2 + $0x80] sm:$0xff] %v319_v21 }
  0xfc   :  { %v295_v22 = vpop.f32.mrf.mxu1 }
  0xfd   :  { %375 = vst [vmem:[#allocation2 + $0x40] sm:$0xff] %v295_v22 }
 0x102   :  { %v322_v23 = vpop.f32.mrf.mxu2 }
 0x103   :  { %384 = vst [vmem:[#allocation2 + $0x88] sm:$0xff] %v322_v23  ;;  %v343_v24 = vpop.f32.mrf.mxu3 }
 0x104   :  { %391 = vst [vmem:[#allocation2 + $0xc0] sm:$0xff] %v343_v24  ;;  %v274_v25 = vpop.f32.mrf.mxu0  ;;  %v298_v26 = vpop.f32.mrf.mxu1 }
 0x105   :  { %368 = vst [vmem:[#allocation2 + $0x8] sm:$0xff] %v274_v25 }
 0x106   :  { %376 = vst [vmem:[#allocation2 + $0x48] sm:$0xff] %v298_v26 }
 0x10b   :  { %v325_v27 = vpop.f32.mrf.mxu2  ;;  %v346_v28 = vpop.f32.mrf.mxu3 }
 0x10c   :  { %385 = vst [vmem:[#allocation2 + $0x90] sm:$0xff] %v325_v27  ;;  %v277_v29 = vpop.f32.mrf.mxu0  ;;  %v301_v30 = vpop.f32.mrf.mxu1 }
 0x10d   :  { %392 = vst [vmem:[#allocation2 + $0xc8] sm:$0xff] %v346_v28 }
 0x10e   :  { %369 = vst [vmem:[#allocation2 + $0x10] sm:$0xff] %v277_v29 }
 0x10f   :  { %377 = vst [vmem:[#allocation2 + $0x50] sm:$0xff] %v301_v30 }
 0x113   :  { %v349_v31 = vpop.f32.mrf.mxu3 }
 0x114   :  { %393 = vst [vmem:[#allocation2 + $0xd0] sm:$0xff] %v349_v31  ;;  %v280_v32 = vpop.f32.mrf.mxu0 }
 0x115   :  { %370 = vst [vmem:[#allocation2 + $0x18] sm:$0xff] %v280_v32 }
 0x11a   :  { %v328_v33 = vpop.f32.mrf.mxu2 }
 0x11b   :  { %386 = vst [vmem:[#allocation2 + $0x98] sm:$0xff] %v328_v33  ;;  %v352_v34 = vpop.f32.mrf.mxu3 }
 0x11c   :  { %394 = vst [vmem:[#allocation2 + $0xd8] sm:$0xff] %v352_v34  ;;  %v304_v35 = vpop.f32.mrf.mxu1 }
 0x11d   :  { %378 = vst [vmem:[#allocation2 + $0x58] sm:$0xff] %v304_v35 }
 0x122   :  { %v331_v36 = vpop.f32.mrf.mxu2 }
 0x123   :  { %387 = vst [vmem:[#allocation2 + $0xa0] sm:$0xff] %v331_v36  ;;  %v355_v37 = vpop.f32.mrf.mxu3 }
 0x124   :  { %395 = vst [vmem:[#allocation2 + $0xe0] sm:$0xff] %v355_v37  ;;  %v283_v38 = vpop.f32.mrf.mxu0  ;;  %v307_v39 = vpop.f32.mrf.mxu1 }
 0x125   :  { %371 = vst [vmem:[#allocation2 + $0x20] sm:$0xff] %v283_v38 }
 0x126   :  { %379 = vst [vmem:[#allocation2 + $0x60] sm:$0xff] %v307_v39 }
 0x12b   :  { %v334_v40 = vpop.f32.mrf.mxu2 }
 0x12c   :  { %388 = vst [vmem:[#allocation2 + $0xa8] sm:$0xff] %v334_v40  ;;  %v286_v41 = vpop.f32.mrf.mxu0  ;;  %v310_v42 = vpop.f32.mrf.mxu1 }
 0x12d   :  { %372 = vst [vmem:[#allocation2 + $0x28] sm:$0xff] %v286_v41 }
 0x12e   :  { %380 = vst [vmem:[#allocation2 + $0x68] sm:$0xff] %v310_v42 }
 0x133   :  { %v358_v43 = vpop.f32.mrf.mxu3 }
 0x134   :  { %396 = vst [vmem:[#allocation2 + $0xe8] sm:$0xff] %v358_v43  ;;  %v289_v44 = vpop.f32.mrf.mxu0 }
 0x135   :  { %373 = vst [vmem:[#allocation2 + $0x30] sm:$0xff] %v289_v44 }
 0x13a   :  { %v337_v45 = vpop.f32.mrf.mxu2 }
 0x13b   :  { %389 = vst [vmem:[#allocation2 + $0xb0] sm:$0xff] %v337_v45  ;;  %v361_v46 = vpop.f32.mrf.mxu3 }
 0x13c   :  { %397 = vst [vmem:[#allocation2 + $0xf0] sm:$0xff] %v361_v46  ;;  %v313_v47 = vpop.f32.mrf.mxu1 }
 0x13d   :  { %381 = vst [vmem:[#allocation2 + $0x70] sm:$0xff] %v313_v47 }
 0x142   :  { %v340_v48 = vpop.f32.mrf.mxu2 }
 0x143   :  { %390 = vst [vmem:[#allocation2 + $0xb8] sm:$0xff] %v340_v48  ;;  %v364_v49 = vpop.f32.mrf.mxu3 }
 0x144   :  { %398 = vst [vmem:[#allocation2 + $0xf8] sm:$0xff] %v364_v49  ;;  %v292_v50 = vpop.f32.mrf.mxu0  ;;  %v316_v51 = vpop.f32.mrf.mxu1 }
 0x145   :  { %374 = vst [vmem:[#allocation2 + $0x38] sm:$0xff] %v292_v50 }
 0x146   :  { %382 = vst [vmem:[#allocation2 + $0x78] sm:$0xff] %v316_v51 }
 0x147   :  { %411 = dma.vmem_to_hbm [thread:$0]  %s404_s20, 4096, %s406_s23, [#allocation3], %s566_s24, %s566_s24, %s567_s25  }
 0x148   :  { %561 = dma.done.wait [#allocation3], 4096  }
 0x149   :  { %562 = vsyncadd [#allocation3], 4294963200 }
 0x14a   :  { %416 = vsyncpa [#allocation3], 1 }

</bundles_post_ra>
